<compile_context>
chip_gen: v7x
topology: tpu7x:2x2x1
jax: 0.10.0
libtpu: 0.0.40
codegen_flags: <defaults>
</compile_context>

<pallas_src>
import jax
import jax.numpy as jnp
from jax.experimental import pallas as pl
from jax.experimental.pallas import tpu as pltpu


# ---------------------------------------------------------------------------
# Fused kernel: y = x @ W + b  plus per-tile MSE/MAE loss partials
# ---------------------------------------------------------------------------
def _fused_linear_loss_kernel(x_ref, w_ref, b_ref, t_ref, y_ref, sq_ref, abs_ref):
    # Whole-K single-step MXU matmul with f32 accumulation; bias folded in.
    acc = jnp.dot(x_ref[...], w_ref[...], preferred_element_type=jnp.float32)
    acc = acc + b_ref[...]
    y = acc.astype(y_ref.dtype)
    y_ref[...] = y

    # Loss partials computed while the y tile is still in VMEM (epilogue
    # fusion): the heads never re-read y from HBM.  One cross-lane reduce per
    # tile only (not per step), so the XLU is off the critical path.
    d = y.astype(jnp.float32) - t_ref[...].astype(jnp.float32)
    sq_ref[...] = jnp.sum(d * d, keepdims=True)
    abs_ref[...] = jnp.sum(jnp.abs(d), keepdims=True)


def fused_linear_and_loss_partials(x2d, w, b, target2d, *, tm=128, tn=128,
                                   out_dtype=jnp.bfloat16):
    """Returns (y, sq_partials, abs_partials).

    y            : (M, N) out_dtype
    sq_partials  : (M//tm, N//tn) f32   per-tile sum((y - t)^2)
    abs_partials : (M//tm, N//tn) f32   per-tile sum(|y - t|)
    """
    M, K = x2d.shape
    K2, N = w.shape
    assert K == K2, (K, K2)
    assert target2d.shape == (M, N), (target2d.shape, (M, N))
    # No wrapper-side casts: require bf16 operands upstream (review item).
    assert x2d.dtype == jnp.bfloat16 and w.dtype == jnp.bfloat16, (x2d.dtype, w.dtype)
    assert M % tm == 0 and N % tn == 0, (M, N, tm, tn)

    gm, gn = M // tm, N // tn
    b2d = b.reshape(1, N).astype(jnp.float32)

    cost = pl.CostEstimate(
        flops=2 * M * N * K + 6 * M * N,
        transcendentals=0,
        bytes_accessed=(M * K * 2 + K * N * 2 + N * 4
                        + M * N * target2d.dtype.itemsize
                        + M * N * jnp.dtype(out_dtype).itemsize
                        + 2 * gm * gn * 4),
    )
    return pl.pallas_call(
        _fused_linear_loss_kernel,
        out_shape=(
            jax.ShapeDtypeStruct((M, N), out_dtype),
            jax.ShapeDtypeStruct((gm, gn), jnp.float32),
            jax.ShapeDtypeStruct((gm, gn), jnp.float32),
        ),
        grid_spec=pltpu.PrefetchScalarGridSpec(
            num_scalar_prefetch=0,
            grid=(gm, gn),                       # (1, 1) at these shapes
            in_specs=[
                pl.BlockSpec((tm, K), lambda i, j: (i, 0)),   # x: full-K row tile
                pl.BlockSpec((K, tn), lambda i, j: (0, j)),   # W: full-K col tile
                pl.BlockSpec((1, tn), lambda i, j: (0, j)),   # bias
                pl.BlockSpec((tm, tn), lambda i, j: (i, j)),  # target
            ],
            out_specs=(
                pl.BlockSpec((tm, tn), lambda i, j: (i, j)),  # y (lane-dense)
                pl.BlockSpec((1, 1), lambda i, j: (i, j)),    # sq partial
                pl.BlockSpec((1, 1), lambda i, j: (i, j)),    # abs partial
            ),
        ),
        compiler_params=pltpu.CompilerParams(
            dimension_semantics=("parallel", "parallel"),     # megacore-safe
            vmem_limit_bytes=32 * 1024 * 1024,                # fits v7x's 64 MiB
        ),
        cost_estimate=cost,
    )(x2d, w, b2d, target2d)


# ---------------------------------------------------------------------------
# Faithful HeadManager port (pure Python orchestration, no tensor ops)
# ---------------------------------------------------------------------------
# TODO(synk): register/forward/get_head/clear_cache are control flow only;
# there is nothing in the original module itself to lower to Pallas.
class HeadManager:
    def __init__(self):
        self.index_name_head = set()

    def register(self, head):
        name_head = head.__class__.__name__
        setattr(self, name_head, head)
        self.index_name_head.add(name_head)
        return self

    def forward(self, model, **kwargs):
        for name in self.index_name_head:
            head = getattr(self, name)
            head.forward(model, **kwargs)

    def get_head(self, klass):
        return getattr(self, klass.__name__)

    def clear_cache(self):
        for name_head in self.index_name_head:
            getattr(self, name_head).clear_cache()


# ---------------------------------------------------------------------------
# Synthetic model / heads driven by the HeadManager (deterministic params)
# ---------------------------------------------------------------------------
class SyntheticModel:
    """Dense projection via the fused Pallas kernel; also caches loss partials
    so the heads never re-read y from HBM (loss fused into the matmul epilogue)."""

    def __init__(self, w, b):
        self.w = w
        self.b = b
        self._cache = {}

    def clear_cache(self):
        self._cache = {}

    def forward(self, *, x, target, **_):
        B, S, K = x.shape
        N = self.w.shape[1]
        y2d, sq, ab = fused_linear_and_loss_partials(
            x.reshape(B * S, K), self.w, self.b, target.reshape(B * S, N))
        self._cache["y"] = y2d.reshape(B, S, N)
        self._cache["sq_partials"] = sq
        self._cache["abs_partials"] = ab
        self._cache["inv_count"] = 1.0 / float(B * S * N)
        return self._cache["y"]


class MSELossHead:
    def __init__(self):
        self._cache = {}

    def clear_cache(self):
        self._cache = {}

    def forward(self, model, **_):
        # Finalize only: tiny sum over (gm, gn) per-tile partials.
        loss = jnp.sum(model._cache["sq_partials"]) * model._cache["inv_count"]
        self._cache["loss"] = loss
        return loss


class MAELossHead:
    def __init__(self):
        self._cache = {}

    def clear_cache(self):
        self._cache = {}

    def forward(self, model, **_):
        loss = jnp.sum(model._cache["abs_partials"]) * model._cache["inv_count"]
        self._cache["loss"] = loss
        return loss


# ---------------------------------------------------------------------------
if __name__ == "__main__":
    B, S = 2, 64                # batch, seq  -> M = 128 rows
    H_IN, H_OUT = 256, 128      # lane-dense hiddens (multiples of 128)

    key = jax.random.PRNGKey(0)
    kx, kt, kw, kb = jax.random.split(key, 4)
    # bf16 operands built at the source (no wrapper-side casts in the kernel path)
    x = jax.random.normal(kx, (B, S, H_IN), dtype=jnp.float32).astype(jnp.bfloat16)
    target = jax.random.normal(kt, (B, S, H_OUT), dtype=jnp.float32)
    w = (jax.random.normal(kw, (H_IN, H_OUT), dtype=jnp.float32) * 0.02).astype(
        jnp.bfloat16
    )
    b = jax.random.normal(kb, (H_OUT,), dtype=jnp.float32) * 0.02

    model = SyntheticModel(w, b)
    manager = HeadManager().register(MSELossHead()).register(MAELossHead())

    # one training-step-style forward: clear caches, run model, dispatch heads
    manager.clear_cache()
    model.clear_cache()
    model.forward(x=x, target=target)
    manager.forward(model, x=x, target=target)

    y = jax.block_until_ready(model._cache["y"])
    mse = jax.block_until_ready(manager.get_head(MSELossHead)._cache["loss"])
    mae = jax.block_until_ready(manager.get_head(MAELossHead)._cache["loss"])

    # References (plain JAX, bf16-rounded operands, f32 math)
    x_f = x.astype(jnp.float32).reshape(B * S, H_IN)
    w_f = w.astype(jnp.float32)
    y_ref = (x_f @ w_f + b.reshape(1, H_OUT)).reshape(B, S, H_OUT)
    y_f32 = y.astype(jnp.float32)
    assert jnp.allclose(y_f32, y_ref, atol=5e-2, rtol=5e-2), "matmul mismatch"

    d = y_f32 - target
    mse_ref = jnp.mean(d * d)
    mae_ref = jnp.mean(jnp.abs(d))
    assert jnp.allclose(mse, mse_ref, atol=1e-4, rtol=1e-4), "MSE mismatch"
    assert jnp.allclose(mae, mae_ref, atol=1e-4, rtol=1e-4), "MAE mismatch"

    print("KERNEL_OK")
</pallas_src>

<mosaic_0001>
module attributes {stable_mosaic.version = 11 : i64} {
  func.func @_fused_linear_loss_kernel(%arg0: i32, %arg1: i32, %arg2: memref<128x256xbf16, #tpu.memory_space<vmem>>, %arg3: memref<256x128xbf16, #tpu.memory_space<vmem>>, %arg4: memref<1x128xf32, #tpu.memory_space<vmem>>, %arg5: memref<128x128xf32, #tpu.memory_space<vmem>>, %arg6: memref<128x128xbf16, #tpu.memory_space<vmem>>, %arg7: memref<1x1xf32, #tpu.memory_space<vmem>>, %arg8: memref<1x1xf32, #tpu.memory_space<vmem>>) attributes {dimension_semantics = [#tpu.dimension_semantics<parallel>, #tpu.dimension_semantics<parallel>], iteration_bounds = array<i64: 1, 1>, scalar_prefetch = 0 : i64, scratch_operands = 0 : i64, tpu.core_type = #tpu.core_type<tc>, window_params = [{transform_indices = @transform_0, window_bounds = array<i64: 128, 256>}, {transform_indices = @transform_1, window_bounds = array<i64: 256, 128>}, {transform_indices = @transform_2, window_bounds = array<i64: 1, 128>}, {transform_indices = @transform_3, window_bounds = array<i64: 128, 128>}, {transform_indices = @transform_4, window_bounds = array<i64: 128, 128>}, {transform_indices = @transform_5, window_bounds = array<i64: 1, 1>}, {transform_indices = @transform_6, window_bounds = array<i64: 1, 1>}]} {
    %c0 = arith.constant 0 : index
    %c0_0 = arith.constant 0 : index
    %0 = vector.load %arg2[%c0, %c0_0] : memref<128x256xbf16, #tpu.memory_space<vmem>>, vector<128x256xbf16>
    %c0_1 = arith.constant 0 : index
    %c0_2 = arith.constant 0 : index
    %1 = vector.load %arg3[%c0_1, %c0_2] : memref<256x128xbf16, #tpu.memory_space<vmem>>, vector<256x128xbf16>
    %cst = arith.constant dense<0.000000e+00> : vector<128x128xf32>
    %2 = tpu.matmul %0, %1, %cst {dimension_numbers = #tpu.dot_dimension_numbers<[1], [0], [0], [1], [0, 0, 1, 1], [], []>} : vector<128x256xbf16>, vector<256x128xbf16>, vector<128x128xf32> -> vector<128x128xf32>
    %c0_3 = arith.constant 0 : index
    %c0_4 = arith.constant 0 : index
    %3 = vector.load %arg4[%c0_3, %c0_4] : memref<1x128xf32, #tpu.memory_space<vmem>>, vector<1x128xf32>
    %4 = vector.broadcast %3 : vector<1x128xf32> to vector<128x128xf32>
    %5 = arith.addf %2, %4 : vector<128x128xf32>
    %6 = arith.truncf %5 : vector<128x128xf32> to vector<128x128xbf16>
    %c0_5 = arith.constant 0 : index
    %c0_6 = arith.constant 0 : index
    %7 = vector.load %arg6[%c0_5, %c0_6] : memref<128x128xbf16, #tpu.memory_space<vmem>>, vector<128x128xbf16>
    tpu.vector_store %arg6[%c0_5, %c0_6], %6 {strides = array<i32>} : memref<128x128xbf16, #tpu.memory_space<vmem>>, vector<128x128xbf16>,
    %8 = arith.extf %6 : vector<128x128xbf16> to vector<128x128xf32>
    %c0_7 = arith.constant 0 : index
    %c0_8 = arith.constant 0 : index
    %9 = vector.load %arg5[%c0_7, %c0_8] : memref<128x128xf32, #tpu.memory_space<vmem>>, vector<128x128xf32>
    %10 = arith.subf %8, %9 : vector<128x128xf32>
    %11 = arith.mulf %10, %10 : vector<128x128xf32>
    %12 = vector.shape_cast %11 : vector<128x128xf32> to vector<1x128x128xf32>
    %cst_9 = arith.constant dense<0.000000e+00> : vector<1xf32>
    %13 = vector.multi_reduction <add>, %12, %cst_9 [1, 2] : vector<1x128x128xf32> to vector<1xf32>
    %14 = vector.shape_cast %13 : vector<1xf32> to vector<1x1x1xf32>
    %15 = vector.extract %14[0, 0, 0] : f32 from vector<1x1x1xf32>
    %16 = vector.broadcast %15 : f32 to vector<1x1xf32>
    %c0_10 = arith.constant 0 : index
    %c0_11 = arith.constant 0 : index
    %17 = vector.load %arg7[%c0_10, %c0_11] : memref<1x1xf32, #tpu.memory_space<vmem>>, vector<1x1xf32>
    tpu.vector_store %arg7[%c0_10, %c0_11], %16 {strides = array<i32>} : memref<1x1xf32, #tpu.memory_space<vmem>>, vector<1x1xf32>,
    %18 = math.absf %10 : vector<128x128xf32>
    %19 = vector.shape_cast %18 : vector<128x128xf32> to vector<1x128x128xf32>
    %cst_12 = arith.constant dense<0.000000e+00> : vector<1xf32>
    %20 = vector.multi_reduction <add>, %19, %cst_12 [1, 2] : vector<1x128x128xf32> to vector<1xf32>
    %21 = vector.shape_cast %20 : vector<1xf32> to vector<1x1x1xf32>
    %22 = vector.extract %21[0, 0, 0] : f32 from vector<1x1x1xf32>
    %23 = vector.broadcast %22 : f32 to vector<1x1xf32>
    %c0_13 = arith.constant 0 : index
    %c0_14 = arith.constant 0 : index
    %24 = vector.load %arg8[%c0_13, %c0_14] : memref<1x1xf32, #tpu.memory_space<vmem>>, vector<1x1xf32>
    tpu.vector_store %arg8[%c0_13, %c0_14], %23 {strides = array<i32>} : memref<1x1xf32, #tpu.memory_space<vmem>>, vector<1x1xf32>,
    return
  }
  func.func @transform_0(%arg0: i32, %arg1: i32) -> (i32, i32) {
    %c0_i32 = arith.constant 0 : i32
    %c0_i32_0 = arith.constant 0 : i32
    return %arg0, %c0_i32 : i32, i32
  }
  func.func @transform_1(%arg0: i32, %arg1: i32) -> (i32, i32) {
    %c0_i32 = arith.constant 0 : i32
    %c0_i32_0 = arith.constant 0 : i32
    return %c0_i32, %arg1 : i32, i32
  }
  func.func @transform_2(%arg0: i32, %arg1: i32) -> (i32, i32) {
    %c0_i32 = arith.constant 0 : i32
    %c0_i32_0 = arith.constant 0 : i32
    return %c0_i32, %arg1 : i32, i32
  }
  func.func @transform_3(%arg0: i32, %arg1: i32) -> (i32, i32) {
    %c0_i32 = arith.constant 0 : i32
    return %arg0, %arg1 : i32, i32
  }
  func.func @transform_4(%arg0: i32, %arg1: i32) -> (i32, i32) {
    %c0_i32 = arith.constant 0 : i32
    return %arg0, %arg1 : i32, i32
  }
  func.func @transform_5(%arg0: i32, %arg1: i32) -> (i32, i32) {
    %c0_i32 = arith.constant 0 : i32
    return %arg0, %arg1 : i32, i32
  }
  func.func @transform_6(%arg0: i32, %arg1: i32) -> (i32, i32) {
    %c0_i32 = arith.constant 0 : i32
    return %arg0, %arg1 : i32, i32
  }
}

</mosaic_0001>

<bundles_post_ra>
// kernel: tpu_custom_call.1
= control target key start
LH: loop header
LB: loop body
LE: loop exit
PB: predicated region body
PF: predicated region fallthrough
CT: control target
= control target key end

     0   :  { %12 = vsyncpa [#allocation3], 0  ;;  %s1197_s0 = inlined_call_operand.hbm [shape: bf16[128,256], index: 0, kind: input, shape index: {}]   ;;  %s1198_s1 = inlined_call_operand.hbm [shape: bf16[256,128], index: 1, kind: input, shape index: {}]   ;;  %s1199_s2 = inlined_call_operand.vmem [shape: f32[1,128], index: 2, kind: input, shape index: {}]   ;;  %s1200_s3 = inlined_call_operand.hbm [shape: f32[128,128], index: 3, kind: input, shape index: {}]   ;;  %s1201_s4 = inlined_call_operand.hbm [shape: bf16[128,128], index: 4, kind: output, shape index: {0}]   ;;  %s1202_s5 = inlined_call_operand.hbm [shape: f32[1,1], index: 5, kind: output, shape index: {1}]   ;;  %s1203_s6 = inlined_call_operand.hbm [shape: f32[1,1], index: 6, kind: output, shape index: {2}]  }
   0x1   :  { %13 = vsyncpa [#allocation6], 0 }
   0x2   :  { %14 = vsyncpa [#allocation4], 0 }
   0x3   :  { %15 = vsyncpa [#allocation10], 0  ;;  %s1036_s21 = smov [#allocation5]   ;;  %s896_s25 = scalar_lea.hbm %s1198_s1, 2048 }
   0x4   :  { %s33_s22 = sshll.u32 %s1036_s21, 4  ;;  %p897_p0 = scmp.ne.s32.totalorder %s1198_s1, %s896_s25  ;;  %s34_s22 = int_to_ptr.vmem [resolvable:$true] %s33_s22 }
   0x5   :  { %p900_p1 = scmp.lt.u32.totalorder %s896_s25, %s1198_s1 }
   0x7   :  { %p902_p2 = pnand %p900_p1, %p897_p0 }
   0x9   :  { %905 = shalt.err (!%p902_p2)
}
   0xa   :  { %s906_s30 = scalar_lea.vmem %s34_s22, 2048  ;;  %p911_p4 = scmp.lt.s32.totalorder %s34_s22, %s34_s22 }
   0xb   :  { %p907_p3 = scmp.ne.s32.totalorder %s34_s22, %s906_s30  ;;  %p912_p5 = scmp.lt.s32.totalorder %s906_s30, %s906_s30 }
   0xd   :  { %p913_p6 = por %p912_p5, %p911_p4 }
   0xf   :  { %p914_p7 = pnand %p913_p6, %p907_p3 }
  0x11   :  { %917 = shalt.err (!%p914_p7)
}
  0x12   :  { %s1037_s7 = smov 64   ;;  %s1038_s8 = smov 4  }
  0x13   :  { %39 = dma.hbm_to_vmem [thread:$0]  %s1198_s1, 2048, %s34_s22, [#allocation6], %s1037_s7, %s1037_s7, %s1038_s8  }
  0x14   :  { %s1039_s11 = smov [#allocation2]   ;;  %s918_s15 = scalar_lea.hbm %s1197_s0, 2048 }
  0x15   :  { %s21_s12 = sshll.u32 %s1039_s11, 4  ;;  %p919_p8 = scmp.ne.s32.totalorder %s1197_s0, %s918_s15  ;;  %s22_s12 = int_to_ptr.vmem [resolvable:$true] %s21_s12 }
  0x16   :  { %p922_p9 = scmp.lt.u32.totalorder %s918_s15, %s1197_s0 }
  0x18   :  { %p924_p10 = pnand %p922_p9, %p919_p8 }
  0x1a   :  { %927 = shalt.err (!%p924_p10)
}
  0x1b   :  { %s928_s20 = scalar_lea.vmem %s22_s12, 2048  ;;  %p933_p12 = scmp.lt.s32.totalorder %s22_s12, %s22_s12 }
  0x1c   :  { %p929_p11 = scmp.ne.s32.totalorder %s22_s12, %s928_s20  ;;  %p934_p13 = scmp.lt.s32.totalorder %s928_s20, %s928_s20 }
  0x1e   :  { %p935_p0 = por %p934_p13, %p933_p12 }
  0x20   :  { %p936_p1 = pnand %p935_p0, %p929_p11 }
  0x22   :  { %939 = shalt.err (!%p936_p1)
}
  0x23   :  { %s1040_s1 = smov 128   ;;  %s1041_s21 = smov 8  }
  0x24   :  { %27 = dma.hbm_to_vmem [thread:$0]  %s1197_s0, 2048, %s22_s12, [#allocation3], %s1040_s1, %s1040_s1, %s1041_s21  }
  0x25   :  { %s1042_s24 = smov [#allocation7]   ;;  %s940_s28 = scalar_lea.hbm %s1200_s3, 2048 }
  0x26   :  { %s47_s25 = sshll.u32 %s1042_s24, 4  ;;  %p941_p2 = scmp.ne.s32.totalorder %s1200_s3, %s940_s28  ;;  %s48_s25 = int_to_ptr.vmem [resolvable:$true] %s47_s25 }
  0x27   :  { %p944_p3 = scmp.lt.u32.totalorder %s940_s28, %s1200_s3 }
  0x29   :  { %p946_p4 = pnand %p944_p3, %p941_p2 }
  0x2b   :  { %949 = shalt.err (!%p946_p4)
}
  0x2c   :  { %s950_s11 = scalar_lea.vmem %s48_s25, 2048  ;;  %p955_p6 = scmp.lt.s32.totalorder %s48_s25, %s48_s25 }
  0x2d   :  { %p951_p5 = scmp.ne.s32.totalorder %s48_s25, %s950_s11  ;;  %p956_p7 = scmp.lt.s32.totalorder %s950_s11, %s950_s11 }
  0x2f   :  { %p957_p8 = por %p956_p7, %p955_p6 }
  0x31   :  { %p958_p9 = pnand %p957_p8, %p951_p5 }
  0x33   :  { %961 = shalt.err (!%p958_p9)
}
  0x34   :  { %53 = dma.hbm_to_vmem [thread:$0]  %s1200_s3, 2048, %s48_s25, [#allocation6], %s1040_s1, %s1040_s1, %s1041_s21  }
  0x35   :  { %1028 = dma.done.wait [#allocation3], 2048  }
  0x36   :  { %1029 = vsyncadd [#allocation3], 4294965248 }
  0x37   :  { %1030 = dma.done.wait [#allocation6], 4096  }
  0x38   :  { %1031 = vsyncadd [#allocation6], 4294963200  ;;  %v856_v0 = vld [vmem:[#allocation5 + $0x40] sm:$0xff]   ;;  %v858_v2 = vld [vmem:[#allocation5 + $0x48] sm:$0xff]  }
  0x39   :  { %v857_v1 = vld [vmem:[#allocation5] sm:$0xff]   ;;  %762 = vmatprep.subr.bf16.mxu0 %v856_v0  ;;  %826 = vmatprep.subr.bf16.mxu1 %v856_v0  ;;  %v859_v3 = vld [vmem:[#allocation5 + $0x8] sm:$0xff]   ;;  %v860_v4 = vld [vmem:[#allocation5 + $0x50] sm:$0xff]  }
  0x3a   :  { %763 = vmatpush3.bf16.msra.mxu0 %v857_v1  ;;  %834 = vmatpush3.bf16.msra.mxu1 %v857_v1  ;;  %v861_v5 = vld [vmem:[#allocation5 + $0x10] sm:$0xff]   ;;  %v862_v6 = vld [vmem:[#allocation5 + $0x58] sm:$0xff]   ;;  %v864_v8 = vld [vmem:[#allocation5 + $0x60] sm:$0xff]  }
  0x3b   :  { %764 = vmatprep.subr.bf16.mxu0 %v858_v2  ;;  %827 = vmatprep.subr.bf16.mxu1 %v858_v2  ;;  %v863_v7 = vld [vmem:[#allocation5 + $0x18] sm:$0xff]   ;;  %v865_v9 = vld [vmem:[#allocation5 + $0x20] sm:$0xff]   ;;  %v866_v10 = vld [vmem:[#allocation5 + $0x68] sm:$0xff]  }
  0x3c   :  { %v874_v11 = vld [vmem:[#allocation2 + $0x4] ss:$8 sps:$4 sm:$0xff]   ;;  %v868_v14 = vld [vmem:[#allocation5 + $0x70] sm:$0xff]   ;;  %v870_v16 = vld [vmem:[#allocation5 + $0x78] sm:$0xff]  }
  0x3d   :  { %v867_v12 = vld [vmem:[#allocation5 + $0x28] sm:$0xff]   ;;  %327 = vmatprep.mubr.bf16.mxu0 %v874_v11  ;;  %v869_v15 = vld [vmem:[#allocation5 + $0x30] sm:$0xff]   ;;  %v871_v17 = vld [vmem:[#allocation5 + $0x38] sm:$0xff]  }
  0x3e   :  { %765 = vmatpush3.bf16.msra.mxu0 %v859_v3  ;;  %835 = vmatpush3.bf16.msra.mxu1 %v859_v3  ;;  %v880_v13 = vld [vmem:[#allocation2 + $0x44] ss:$8 sps:$4 sm:$0xff]   ;;  %v872_v18 = vld [vmem:[#allocation2] ss:$8 sps:$4 sm:$0xff]   ;;  %v875_v20 = vld [vmem:[#allocation2 + $0x14] ss:$8 sps:$4 sm:$0xff]  }
  0x3f   :  { %766 = vmatprep.subr.bf16.mxu0 %v860_v4  ;;  %828 = vmatprep.subr.bf16.mxu1 %v860_v4  ;;  %v878_v19 = vld [vmem:[#allocation2 + $0x40] ss:$8 sps:$4 sm:$0xff]   ;;  %v884_v21 = vld [vmem:[#allocation2 + $0x54] ss:$8 sps:$4 sm:$0xff]   ;;  %v877_v22 = vld [vmem:[#allocation2 + $0x10] ss:$8 sps:$4 sm:$0xff]  }
  0x40   :  { %359 = vmatprep.mubr.bf16.mxu1 %v880_v13  ;;  %v886_v23 = vld [vmem:[#allocation2 + $0x50] ss:$8 sps:$4 sm:$0xff]   ;;  %v881_v24 = vld [vmem:[#allocation2 + $0x24] ss:$8 sps:$4 sm:$0xff]   ;;  %v883_v26 = vld [vmem:[#allocation2 + $0x20] ss:$8 sps:$4 sm:$0xff]  }
  0x41   :  { %v890_v25 = vld [vmem:[#allocation2 + $0x64] ss:$8 sps:$4 sm:$0xff]   ;;  %v892_v27 = vld [vmem:[#allocation2 + $0x60] ss:$8 sps:$4 sm:$0xff]   ;;  %v887_v28 = vld [vmem:[#allocation2 + $0x34] ss:$8 sps:$4 sm:$0xff]  }
  0x42   :  { %767 = vmatpush3.bf16.msra.mxu0 %v861_v5  ;;  %836 = vmatpush3.bf16.msra.mxu1 %v861_v5  ;;  %v893_v29 = vld [vmem:[#allocation2 + $0x74] ss:$8 sps:$4 sm:$0xff]   ;;  %v889_v30 = vld [vmem:[#allocation2 + $0x30] ss:$8 sps:$4 sm:$0xff]   ;;  %v1123_v40 = vld [vmem:[%s1199_s2] ss:$0 sm:$0xff] }
  0x43   :  { %768 = vmatprep.subr.bf16.mxu0 %v862_v6  ;;  %829 = vmatprep.subr.bf16.mxu1 %v862_v6  ;;  %v895_v31 = vld [vmem:[#allocation2 + $0x70] ss:$8 sps:$4 sm:$0xff]   ;;  %v488_v57 = vld [vmem:[#allocation7] sm:$0xff]  ;;  %v489_v61 = vld [vmem:[#allocation7 + $0x8] sm:$0xff]  ;;  %s1043_s2 = smov [#allocation8]  }
  0x44   :  { %s610_s14 = sshll.u32 %s1043_s2, 4  ;;  %s611_s14 = int_to_ptr.vmem [resolvable:$true] %s610_s14 }
  0x45   :  { %s962_s15 = scalar_lea.vmem %s611_s14, 1024  ;;  %p967_p11 = scmp.lt.s32.totalorder %s611_s14, %s611_s14 }
  0x46   :  { %769 = vmatpush3.bf16.msra.mxu0 %v863_v7  ;;  %837 = vmatpush3.bf16.msra.mxu1 %v863_v7  ;;  %p963_p10 = scmp.ne.s32.totalorder %s611_s14, %s962_s15  ;;  %p968_p12 = scmp.lt.s32.totalorder %s962_s15, %s962_s15 }
  0x47   :  { %770 = vmatprep.subr.bf16.mxu0 %v864_v8  ;;  %830 = vmatprep.subr.bf16.mxu1 %v864_v8 }
  0x48   :  { %p969_p13 = por %p968_p12, %p967_p11 }
  0x4a   :  { %771 = vmatpush3.bf16.msra.mxu0 %v865_v9  ;;  %838 = vmatpush3.bf16.msra.mxu1 %v865_v9  ;;  %p970_p0 = pnand %p969_p13, %p963_p10 }
  0x4b   :  { %772 = vmatprep.subr.bf16.mxu0 %v866_v10  ;;  %831 = vmatprep.subr.bf16.mxu1 %v866_v10 }
  0x4e   :  { %773 = vmatpush3.bf16.msra.mxu0 %v867_v12  ;;  %839 = vmatpush3.bf16.msra.mxu1 %v867_v12 }
  0x4f   :  { %774 = vmatprep.subr.bf16.mxu0 %v868_v14  ;;  %832 = vmatprep.subr.bf16.mxu1 %v868_v14 }
  0x52   :  { %775 = vmatpush3.bf16.msra.mxu0 %v869_v15  ;;  %840 = vmatpush3.bf16.msra.mxu1 %v869_v15 }
  0x53   :  { %776 = vmatprep.subr.bf16.mxu0 %v870_v16  ;;  %833 = vmatprep.subr.bf16.mxu1 %v870_v16  ;;  %v490_v16 = vld [vmem:[#allocation7 + $0x10] sm:$0xff] }
  0x56   :  { %777 = vmatpush3.bf16.msra.mxu0 %v871_v17  ;;  %841 = vmatpush3.bf16.msra.mxu1 %v871_v17  ;;  %v491_v17 = vld [vmem:[#allocation7 + $0x18] sm:$0xff] }
  0x59   :  { %328 = vmatmul.mubr.bf16.vlgmr.msra.gmra.mrb[0].mxu0 %v872_v18  ;;  %360 = vmatmul.mubr.bf16.vlgmr.msra.gmra.mrb[0].mxu1 %v878_v19 }
  0x5a   :  { %335 = vmatprep.mubr.bf16.mxu0 %v875_v20  ;;  %367 = vmatprep.mubr.bf16.mxu1 %v884_v21 }
  0x61   :  { %336 = vmatmul.mubr.bf16.gmra.mrb[4].mxu0 %v877_v22  ;;  %368 = vmatmul.mubr.bf16.gmra.mrb[4].mxu1 %v886_v23 }
  0x62   :  { %343 = vmatprep.mubr.bf16.mxu0 %v881_v24  ;;  %375 = vmatprep.mubr.bf16.mxu1 %v890_v25 }
  0x69   :  { %344 = vmatmul.mubr.bf16.gmra.mrb[8].mxu0 %v883_v26  ;;  %376 = vmatmul.mubr.bf16.gmra.mrb[8].mxu1 %v892_v27 }
  0x6a   :  { %351 = vmatprep.mubr.bf16.mxu0 %v887_v28  ;;  %383 = vmatprep.mubr.bf16.mxu1 %v893_v29 }
  0x71   :  { %352 = vmatmul.mubr.bf16.gmra.mrb[12].mxu0 %v889_v30  ;;  %384 = vmatmul.mubr.bf16.gmra.mrb[12].mxu1 %v895_v31 }
 0x12c   :  { %v778_v32 = vpop.f32.mrb[0].mxu0  ;;  %v802_v33 = vpop.f32.mrb[0].mxu1 }
 0x12d   :  { %v779_v34 = vpop.f32.mrb[1].mxu0  ;;  %v803_v35 = vpop.f32.mrb[1].mxu1 }
 0x12e   :  { %v780_v36 = vadd.f32 %v779_v34, %v778_v32  ;;  %v781_v37 = vpop.f32.mrb[2].mxu0  ;;  %v804_v38 = vadd.f32 %v803_v35, %v802_v33  ;;  %v805_v39 = vpop.f32.mrb[2].mxu1 }
 0x12f   :  { %v782_v41 = vpop.f32.mrb[3].mxu0  ;;  %v806_v42 = vpop.f32.mrb[3].mxu1 }
 0x130   :  { %v783_v43 = vadd.f32 %v782_v41, %v781_v37  ;;  %v362_v44 = vadd.f32 %v804_v38, %v1123_v40  ;;  %v807_v45 = vadd.f32 %v806_v42, %v805_v39  ;;  %v330_v46 = vadd.f32 %v780_v36, %v1123_v40 }
 0x132   :  { %v333_v47 = vadd.f32 %v783_v43, %v1123_v40  ;;  %v365_v48 = vadd.f32 %v807_v45, %v1123_v40 }
 0x134   :  { %v392_v49 = vpack.c.bf16 %v333_v47, %v330_v46  ;;  %v784_v50 = vpop.f32.mrb[4].mxu0  ;;  %v1129_v51 = vpack.c.bf16 %v365_v48, %v362_v44  ;;  %v808_v52 = vpop.f32.mrb[4].mxu1 }
 0x135   :  { %v785_v53 = vpop.f32.mrb[5].mxu0  ;;  %v809_v54 = vpop.f32.mrb[5].mxu1 }
 0x136   :  { %719 = vst [vmem:[#allocation8] sm:$0xff] %v392_v49   ;;  %v472_v55 = vunpack.c.l.bf16 %v392_v49  ;;  %v473_v56 = vunpack.c.h.bf16 %v392_v49  ;;  %v786_v58 = vadd.f32 %v785_v53, %v784_v50  ;;  %v787_v59 = vpop.f32.mrb[6].mxu0  ;;  %758 = vst [vmem:[#allocation8 + $0x20] sm:$0xff] %v1129_v51   ;;  %v811_v60 = vpop.f32.mrb[6].mxu1  ;;  %v810_v63 = vadd.f32 %v809_v54, %v808_v52  ;;  %v492_v49 = vld [vmem:[#allocation7 + $0x20] sm:$0xff]  ;;  %v493_v50 = vld [vmem:[#allocation7 + $0x28] sm:$0xff] }
 0x137   :  { %v788_v62 = vpop.f32.mrb[7].mxu0  ;;  %v812_v0 = vpop.f32.mrb[7].mxu1 }
 0x138   :  { %v789_v1 = vadd.f32 %v788_v62, %v787_v59  ;;  %v504_v2 = vsub.f32 %v472_v55, %v488_v57  ;;  %v813_v3 = vadd.f32 %v812_v0, %v811_v60  ;;  %v505_v4 = vsub.f32 %v473_v56, %v489_v61 }
 0x139   :  { %v370_v5 = vadd.f32 %v810_v63, %v1123_v40  ;;  %v338_v6 = vadd.f32 %v786_v58, %v1123_v40 }
 0x13a   :  { %v341_v7 = vadd.f32 %v789_v1, %v1123_v40  ;;  %v373_v9 = vadd.f32 %v813_v3, %v1123_v40  ;;  %v520_v11 = vmul.f32 %v504_v2, %v504_v2  ;;  %v521_v15 = vmul.f32 %v505_v4, %v505_v4 }
 0x13b   :  { %v563_v23 = vand.u32 2147483647, %v504_v2  ;;  %v564_v24 = vand.u32 2147483647, %v505_v4 }
 0x13c   :  { %v790_v8 = vpop.f32.mrb[8].mxu0  ;;  %v814_v10 = vpop.f32.mrb[8].mxu1  ;;  %v393_v12 = vpack.c.bf16 %v341_v7, %v338_v6  ;;  %v1136_v20 = vpack.c.bf16 %v373_v9, %v370_v5  ;;  %v536_v36 = vadd.f32 %v521_v15, %v520_v11 }
 0x13d   :  { %v791_v13 = vpop.f32.mrb[9].mxu0  ;;  %v815_v14 = vpop.f32.mrb[9].mxu1  ;;  %v579_v37 = vadd.f32 %v564_v24, %v563_v23 }
 0x13e   :  { %v792_v18 = vadd.f32 %v791_v13, %v790_v8  ;;  %v793_v19 = vpop.f32.mrb[10].mxu0  ;;  %v816_v21 = vadd.f32 %v815_v14, %v814_v10  ;;  %v817_v22 = vpop.f32.mrb[10].mxu1  ;;  %755 = vst [vmem:[#allocation8 + $0x8] sm:$0xff] %v393_v12   ;;  %v474_v25 = vunpack.c.l.bf16 %v393_v12  ;;  %v475_v26 = vunpack.c.h.bf16 %v393_v12  ;;  %759 = vst [vmem:[#allocation8 + $0x28] sm:$0xff] %v1136_v20  }
 0x13f   :  { %v794_v27 = vpop.f32.mrb[11].mxu0  ;;  %v818_v28 = vpop.f32.mrb[11].mxu1 }
 0x140   :  { %v795_v29 = vadd.f32 %v794_v27, %v793_v19  ;;  %v506_v30 = vsub.f32 %v474_v25, %v490_v16  ;;  %v507_v31 = vsub.f32 %v475_v26, %v491_v17  ;;  %v819_v32 = vadd.f32 %v818_v28, %v817_v22  ;;  %v494_v19 = vld [vmem:[#allocation7 + $0x30] sm:$0xff]  ;;  %v496_v26 = vld [vmem:[#allocation7 + $0x40] sm:$0xff] }
 0x141   :  { %v346_v33 = vadd.f32 %v792_v18, %v1123_v40  ;;  %v378_v35 = vadd.f32 %v816_v21, %v1123_v40  ;;  %v495_v21 = vld [vmem:[#allocation7 + $0x38] sm:$0xff]  ;;  %v480_v22 = vunpack.c.l.bf16 %v1129_v51  ;;  %v481_v25 = vunpack.c.h.bf16 %v1129_v51 }
 0x142   :  { %v349_v34 = vadd.f32 %v795_v29, %v1123_v40  ;;  %v522_v38 = vmul.f32 %v506_v30, %v506_v30  ;;  %v565_v39 = vand.u32 2147483647, %v506_v30  ;;  %v381_v43 = vadd.f32 %v819_v32, %v1123_v40 }
 0x143   :  { %v523_v45 = vmul.f32 %v507_v31, %v507_v31  ;;  %v566_v47 = vand.u32 2147483647, %v507_v31  ;;  %v482_v29 = vunpack.c.l.bf16 %v1136_v20  ;;  %v512_v30 = vsub.f32 %v480_v22, %v496_v26  ;;  %v498_v31 = vld [vmem:[#allocation7 + $0x50] sm:$0xff] }
 0x144   :  { %v394_v41 = vpack.c.bf16 %v349_v34, %v346_v33  ;;  %v796_v42 = vpop.f32.mrb[12].mxu0  ;;  %v820_v44 = vpop.f32.mrb[12].mxu1  ;;  %v537_v46 = vadd.f32 %v536_v36, %v522_v38  ;;  %v580_v48 = vadd.f32 %v579_v37, %v565_v39  ;;  %v1143_v58 = vpack.c.bf16 %v381_v43, %v378_v35  ;;  %v499_v36 = vld [vmem:[#allocation7 + $0x58] sm:$0xff] }
 0x145   :  { %v797_v52 = vpop.f32.mrb[13].mxu0  ;;  %v821_v53 = vpop.f32.mrb[13].mxu1  ;;  %v483_v35 = vunpack.c.h.bf16 %v1136_v20  ;;  %v528_v43 = vmul.f32 %v512_v30, %v512_v30 }
 0x146   :  { %756 = vst [vmem:[#allocation8 + $0x10] sm:$0xff] %v394_v41   ;;  %v476_v54 = vunpack.c.l.bf16 %v394_v41  ;;  %v477_v55 = vunpack.c.h.bf16 %v394_v41  ;;  %v798_v56 = vadd.f32 %v797_v52, %v796_v42  ;;  %v799_v57 = vpop.f32.mrb[14].mxu0  ;;  %v823_v59 = vpop.f32.mrb[14].mxu1  ;;  %v538_v60 = vadd.f32 %v537_v46, %v523_v45  ;;  %760 = vst [vmem:[#allocation8 + $0x30] sm:$0xff] %v1143_v58  }
 0x147   :  { %v581_v61 = vadd.f32 %v580_v48, %v566_v47  ;;  %v800_v62 = vpop.f32.mrb[15].mxu0  ;;  %v822_v63 = vadd.f32 %v821_v53, %v820_v44  ;;  %v824_v0 = vpop.f32.mrb[15].mxu1  ;;  %v514_v42 = vsub.f32 %v482_v29, %v498_v31  ;;  %v484_v51 = vunpack.c.l.bf16 %v1143_v58  ;;  %v500_v47 = vld [vmem:[#allocation7 + $0x60] sm:$0xff]  ;;  %v501_v53 = vld [vmem:[#allocation7 + $0x68] sm:$0xff] }
 0x148   :  { %v508_v1 = vsub.f32 %v476_v54, %v492_v49  ;;  %v509_v2 = vsub.f32 %v477_v55, %v493_v50  ;;  %v801_v3 = vadd.f32 %v800_v62, %v799_v57  ;;  %v825_v5 = vadd.f32 %v824_v0, %v823_v59  ;;  %v502_v62 = vld [vmem:[#allocation7 + $0x70] sm:$0xff] }
 0x149   :  { %v386_v4 = vadd.f32 %v822_v63, %v1123_v40  ;;  %v354_v8 = vadd.f32 %v798_v56, %v1123_v40  ;;  %v571_v44 = vand.u32 2147483647, %v512_v30  ;;  %v515_v48 = vsub.f32 %v483_v35, %v499_v36 }
 0x14a   :  { %v524_v6 = vmul.f32 %v508_v1, %v508_v1  ;;  %v567_v7 = vand.u32 2147483647, %v508_v1  ;;  %v357_v9 = vadd.f32 %v801_v3, %v1123_v40  ;;  %v389_v10 = vadd.f32 %v825_v5, %v1123_v40  ;;  %v497_v40 = vld [vmem:[#allocation7 + $0x48] sm:$0xff]  ;;  %v503_v5 = vld [vmem:[#allocation7 + $0x78] sm:$0xff] }
 0x14b   :  { %v525_v11 = vmul.f32 %v509_v2, %v509_v2  ;;  %v568_v13 = vand.u32 2147483647, %v509_v2  ;;  %v513_v34 = vsub.f32 %v481_v25, %v497_v40  ;;  %v485_v49 = vunpack.c.h.bf16 %v1143_v58 }
 0x14c   :  { %v539_v12 = vadd.f32 %v538_v60, %v524_v6  ;;  %v582_v14 = vadd.f32 %v581_v61, %v567_v7  ;;  %v395_v15 = vpack.c.bf16 %v357_v9, %v354_v8  ;;  %v399_v16 = vpack.c.bf16 %v389_v10, %v386_v4 }
 0x14d   :  { %v529_v50 = vmul.f32 %v513_v34, %v513_v34  ;;  %v572_v52 = vand.u32 2147483647, %v513_v34  ;;  %v573_v55 = vand.u32 2147483647, %v514_v42  ;;  %v516_v56 = vsub.f32 %v484_v51, %v500_v47 }
 0x14e   :  { %v540_v17 = vadd.f32 %v539_v12, %v525_v11  ;;  %v583_v18 = vadd.f32 %v582_v14, %v568_v13  ;;  %757 = vst [vmem:[#allocation8 + $0x18] sm:$0xff] %v395_v15   ;;  %v478_v23 = vunpack.c.l.bf16 %v395_v15  ;;  %v479_v24 = vunpack.c.h.bf16 %v395_v15  ;;  %761 = vst [vmem:[#allocation8 + $0x38] sm:$0xff] %v399_v16  }
 0x14f   :  { %v486_v57 = vunpack.c.l.bf16 %v399_v16  ;;  %v530_v59 = vmul.f32 %v514_v42, %v514_v42  ;;  %v517_v63 = vsub.f32 %v485_v49, %v501_v53  ;;  %v531_v0 = vmul.f32 %v515_v48, %v515_v48 }
 0x150   :  { %v510_v27 = vsub.f32 %v478_v23, %v494_v19  ;;  %v511_v28 = vsub.f32 %v479_v24, %v495_v21  ;;  %v487_v1 = vunpack.c.h.bf16 %v399_v16  ;;  %v574_v3 = vand.u32 2147483647, %v515_v48 }
 0x151   :  { %v532_v58 = vmul.f32 %v516_v56, %v516_v56  ;;  %v518_v6 = vsub.f32 %v486_v57, %v502_v62  ;;  %v575_v8 = vand.u32 2147483647, %v516_v56  ;;  %v533_v10 = vmul.f32 %v517_v63, %v517_v63 }
 0x152   :  { %v526_v32 = vmul.f32 %v510_v27, %v510_v27  ;;  %v569_v33 = vand.u32 2147483647, %v510_v27  ;;  %v527_v37 = vmul.f32 %v511_v28, %v511_v28  ;;  %v570_v39 = vand.u32 2147483647, %v511_v28 }
 0x153   :  { %v519_v11 = vsub.f32 %v487_v1, %v503_v5  ;;  %v576_v13 = vand.u32 2147483647, %v517_v63  ;;  %v534_v15 = vmul.f32 %v518_v6, %v518_v6 }
 0x154   :  { %v541_v38 = vadd.f32 %v540_v17, %v526_v32  ;;  %v584_v41 = vadd.f32 %v583_v18, %v569_v33  ;;  %v577_v18 = vand.u32 2147483647, %v518_v6 }
 0x155   :  { %v535_v21 = vmul.f32 %v519_v11, %v519_v11  ;;  %v578_v22 = vand.u32 2147483647, %v519_v11 }
 0x156   :  { %v542_v45 = vadd.f32 %v541_v38, %v527_v37  ;;  %v585_v46 = vadd.f32 %v584_v41, %v570_v39 }
 0x158   :  { %v543_v20 = vadd.f32 %v542_v45, %v528_v43  ;;  %v586_v54 = vadd.f32 %v585_v46, %v571_v44 }
 0x15a   :  { %v544_v60 = vadd.f32 %v543_v20, %v529_v50  ;;  %v587_v61 = vadd.f32 %v586_v54, %v572_v52 }
 0x15c   :  { %v545_v2 = vadd.f32 %v544_v60, %v530_v59  ;;  %v588_v4 = vadd.f32 %v587_v61, %v573_v55 }
 0x15e   :  { %v546_v7 = vadd.f32 %v545_v2, %v531_v0  ;;  %v589_v9 = vadd.f32 %v588_v4, %v574_v3 }
 0x160   :  { %v547_v12 = vadd.f32 %v546_v7, %v532_v58  ;;  %v590_v14 = vadd.f32 %v589_v9, %v575_v8 }
 0x162   :  { %v548_v17 = vadd.f32 %v547_v12, %v533_v10  ;;  %v591_v19 = vadd.f32 %v590_v14, %v576_v13 }
 0x164   :  { %v549_v16 = vadd.f32 %v548_v17, %v534_v15  ;;  %v592_v23 = vadd.f32 %v591_v19, %v577_v18 }
 0x166   :  { %v550_v24 = vadd.f32 %v549_v16, %v535_v21  ;;  %v593_v25 = vadd.f32 %v592_v23, %v578_v22 }
 0x168   :  { %551 = vadd.xlane.f32.xlu0 %v550_v24 }
 0x16c   :  { %594 = vadd.xlane.f32.xlu0 %v593_v25 }
 0x16d   :  { %973 = shalt.err (!%p970_p0)
}
 0x16e   :  { %s974_s18 = scalar_lea.hbm %s1201_s4, 1024 }
 0x16f   :  { %p975_p1 = scmp.ne.s32.totalorder %s1201_s4, %s974_s18  ;;  %p978_p2 = scmp.lt.u32.totalorder %s974_s18, %s1201_s4 }
 0x171   :  { %p980_p3 = pnand %p978_p2, %p975_p1 }
 0x173   :  { %983 = shalt.err (!%p980_p3)
}
 0x174   :  { %616 = dma.vmem_to_hbm [thread:$0]  %s611_s14, 1024, %s1201_s4, [#allocation4], %s1037_s7, %s1037_s7, %s1038_s8   ;;  %vm561_vm0 = vcmask 0  }
 0x175   :  { %s1044_s24 = smov [#allocation9]   ;;  %s1045_s7 = smov [#allocation11]  }
 0x176   :  { %s623_s25 = sshll.u32 %s1044_s24, 4  ;;  %s633_s8 = sshll.u32 %s1045_s7, 4  ;;  %s624_s25 = int_to_ptr.vmem [resolvable:$true] %s623_s25  ;;  %s634_s8 = int_to_ptr.vmem [resolvable:$true] %s633_s8 }
 0x177   :  { %s984_s26 = scalar_lea.vmem %s624_s25, 16  ;;  %s988_s27 = scalar_lea.vmem %s624_s25, 32 }
 0x178   :  { %p985_p4 = scmp.ne.s32.totalorder %s624_s25, %s984_s26  ;;  %p989_p5 = scmp.lt.s32.totalorder %s624_s25, %s624_s25 }
 0x179   :  { %p990_p6 = scmp.lt.s32.totalorder %s988_s27, %s984_s26 }
 0x17b   :  { %p991_p7 = por %p990_p6, %p989_p5 }
 0x17d   :  { %p992_p8 = pnand %p991_p7, %p985_p4 }
 0x1f5   :  { %v552_v26 = vpop.xlane.xlu0 %551 }
 0x1f6   :  { %v553_v40 = vrot.slane %v552_v26, 4 }
 0x1f8   :  { %v554_v27 = vadd.f32 %v553_v40, %v552_v26 }
 0x1f9   :  { %v595_v28 = vpop.xlane.xlu0 %594 }
 0x1fa   :  { %v555_v29 = vrot.slane %v554_v27, 2  ;;  %v596_v30 = vrot.slane %v595_v28, 4 }
 0x1fc   :  { %v597_v31 = vadd.f32 %v596_v30, %v595_v28  ;;  %v556_v32 = vadd.f32 %v555_v29, %v554_v27 }
 0x1fe   :  { %v598_v33 = vrot.slane %v597_v31, 2  ;;  %v557_v34 = vrot.slane %v556_v32, 1 }
 0x200   :  { %v599_v35 = vadd.f32 %v598_v33, %v597_v31  ;;  %v558_v36 = vadd.f32 %v557_v34, %v556_v32 }
 0x202   :  { %842 = vpush %v558_v36  ;;  %v600_v37 = vrot.slane %v599_v35, 1 }
 0x204   :  { %v601_v38 = vadd.f32 %v600_v37, %v599_v35 }
 0x206   :  { %844 = vpush %v601_v38 }
 0x233   :  { %s843_s4 = spop %842 }
 0x234   :  { %v560_v39 = vstv %s843_s4 }
 0x235   :  { %562 = vst.msk [vmem:[#allocation9] sm:$0x1] %vm561_vm0, %v560_v39 }
 0x236   :  { %995 = shalt.err (!%p992_p8)
}
 0x237   :  { %s996_s30 = scalar_lea.hbm %s1202_s5, 16 }
 0x238   :  { %p997_p9 = scmp.ne.s32.totalorder %s1202_s5, %s996_s30  ;;  %p1000_p10 = scmp.lt.u32.totalorder %s996_s30, %s1202_s5 }
 0x23a   :  { %p1002_p11 = pnand %p1000_p10, %p997_p9 }
 0x23c   :  { %1005 = shalt.err (!%p1002_p11)
}
 0x23d   :  { %626 = dma.vmem_to_hbm [thread:$0]  %s624_s25, 16, %s1202_s5, [#allocation10]  }
 0x23e   :  { %s845_s13 = spop %844  ;;  %s1006_s2 = scalar_lea.vmem %s634_s8, 16 }
 0x23f   :  { %v603_v41 = vstv %s845_s13  ;;  %p1007_p12 = scmp.ne.s32.totalorder %s634_s8, %s1006_s2  ;;  %s1010_s14 = scalar_lea.vmem %s634_s8, 32 }
 0x240   :  { %604 = vst.msk [vmem:[#allocation11] sm:$0x1] %vm561_vm0, %v603_v41  ;;  %p1011_p13 = scmp.lt.s32.totalorder %s634_s8, %s634_s8  ;;  %p1012_p0 = scmp.lt.s32.totalorder %s1010_s14, %s1006_s2 }
 0x242   :  { %p1013_p1 = por %p1012_p0, %p1011_p13 }
 0x244   :  { %p1014_p2 = pnand %p1013_p1, %p1007_p12 }
 0x246   :  { %1017 = shalt.err (!%p1014_p2)
}
 0x247   :  { %s1018_s17 = scalar_lea.hbm %s1203_s6, 16 }
 0x248   :  { %p1019_p3 = scmp.ne.s32.totalorder %s1203_s6, %s1018_s17  ;;  %p1022_p4 = scmp.lt.u32.totalorder %s1018_s17, %s1203_s6 }
 0x24a   :  { %p1024_p5 = pnand %p1022_p4, %p1019_p3 }
 0x24c   :  { %1027 = shalt.err (!%p1024_p5)
}
 0x24d   :  { %636 = dma.vmem_to_hbm [thread:$0]  %s634_s8, 16, %s1203_s6, [#allocation10]  }
 0x24e   :  { %1032 = dma.done.wait [#allocation4], 1024  }
 0x24f   :  { %1033 = vsyncadd [#allocation4], 4294966272 }
 0x250   :  { %1034 = dma.done.wait [#allocation10], 32  }
 0x251   :  { %1035 = vsyncadd [#allocation10], 4294967264 }
 0x252   :  { %646 = vsyncpa [#allocation3], 1 }
 0x253   :  { %647 = vsyncpa [#allocation6], 1 }
 0x254   :  { %648 = vsyncpa [#allocation4], 1 }
 0x255   :  { %649 = vsyncpa [#allocation10], 1 }

</bundles_post_ra>
